<compile_context>
chip_gen: v6e
topology: v6e:2x2x1
jax: 0.10.0
libtpu: 0.0.40
codegen_flags: <defaults>
</compile_context>

<pallas_src>
import math

import jax
import jax.numpy as jnp
from jax import lax
from jax.experimental import pallas as pl
from jax.experimental.pallas import tpu as pltpu


# --------------------------------------------------------------------------- kernel

def _make_kernel(k1p, c, y_dim, batch):
    # negative[j,k] = all_probs[j,k] + log((B-1)+exp(-20)) - log(B-1)   (analytic collapse)
    neg_const = math.log((batch - 1.0) + math.exp(-20.0)) - math.log(batch - 1.0)

    def kernel(x_ref, y_ref, p_ref, out_ref):
        xa = x_ref[...]                      # (B, k1p)   [x | 1 | 0-pad]
        y = y_ref[...]                       # (B, y_dim)
        w1 = p_ref[0:k1p, :]                 # (k1p, c)   fused layer-1 (+ bias row + passthrough col)
        w2 = p_ref[k1p:k1p + c, :]           # (c, c)     block-diagonal layer-2 (+ bias row)

        # fused MLPs: biases folded into the matmuls via the augmented ones column
        h = jnp.maximum(jnp.dot(xa, w1, preferred_element_type=jnp.float32), 0.0)   # (B, c)
        o2 = jnp.dot(h, w2, preferred_element_type=jnp.float32)                     # (B, 2*y_dim)
        mu = o2[:, :y_dim]                                                           # (B, D)
        logvar = jnp.tanh(o2[:, y_dim:])                                             # (B, D)
        inv_var = jnp.exp(-logvar)           # one EUP exp; replaces all divisions

        # all_probs[j,k] = sum_d( -(y[k,d]-mu[j,d])^2/2 * inv_var[j,d] - logvar[j,d]/2 )
        # direct (B,B,D) broadcast: tiny at B=8 (8 KiB).
        # TODO(synk): for large B/D switch to the MXU expansion
        #   (inv_var @ (y*y)^T, (mu*inv_var) @ y^T) plus a parallel grid over rows.
        diff = y[None, :, :] - mu[:, None, :]                               # (B, B, D)
        quad = jnp.sum(diff * diff * inv_var[:, None, :], axis=-1)          # (B, B)
        lvsum = jnp.sum(logvar, axis=-1, keepdims=True)                     # (B, 1)
        all_probs = -0.5 * (quad + lvsum)                                   # (B, B)

        # positive[k] == all_probs[k,k];  result = mean(positive) - mean(negative)
        r = lax.broadcasted_iota(jnp.int32, (batch, batch), 0)
        col = lax.broadcasted_iota(jnp.int32, (batch, batch), 1)
        mean_pos = jnp.sum(jnp.where(r == col, all_probs, 0.0)) / float(batch)
        mean_neg = jnp.sum(all_probs) / float(batch * batch) + neg_const

        out_ref[0, 0] = (mean_pos - mean_neg).astype(out_ref.dtype)

    return kernel


# ------------------------------------------------------------------- host-side packing

def _pack_params(params, x_dim, hidden_half, y_dim):
    """Pack the 8 Linear tensors into one (k1p + 2*y_dim, 2*y_dim) f32 buffer."""
    w1m, b1m, w2m, b2m, w1v, b1v, w2v, b2v = params
    h2 = 2 * hidden_half
    c = 2 * y_dim
    assert c >= h2 + 1, "packed layout requires 2*y_dim >= hidden_size + 1"
    k1p = ((x_dim + 1 + 7) // 8) * 8         # layer-1 contraction rows, sublane-aligned

    w1 = jnp.zeros((k1p, c), jnp.float32)
    w1 = w1.at[:x_dim, :hidden_half].set(w1m.astype(jnp.float32))
    w1 = w1.at[:x_dim, hidden_half:h2].set(w1v.astype(jnp.float32))
    w1 = w1.at[x_dim, :hidden_half].set(b1m.reshape(-1).astype(jnp.float32))
    w1 = w1.at[x_dim, hidden_half:h2].set(b1v.reshape(-1).astype(jnp.float32))
    w1 = w1.at[x_dim, h2].set(1.0)           # passes the ones column through ReLU to layer 2

    w2 = jnp.zeros((c, c), jnp.float32)
    w2 = w2.at[:hidden_half, :y_dim].set(w2m.astype(jnp.float32))
    w2 = w2.at[hidden_half:h2, y_dim:].set(w2v.astype(jnp.float32))
    w2 = w2.at[h2, :y_dim].set(b2m.reshape(-1).astype(jnp.float32))
    w2 = w2.at[h2, y_dim:].set(b2v.reshape(-1).astype(jnp.float32))

    return jnp.concatenate([w1, w2], axis=0), k1p


def l1out_ub_forward(x_samples, y_samples, params, *, hidden_half):
    b, x_dim = x_samples.shape
    _, y_dim = y_samples.shape
    packed, k1p = _pack_params(params, x_dim, hidden_half, y_dim)
    c = 2 * y_dim

    x_aug = jnp.zeros((b, k1p), jnp.float32)
    x_aug = x_aug.at[:, :x_dim].set(x_samples.astype(jnp.float32))
    x_aug = x_aug.at[:, x_dim].set(1.0)

    vmem = pl.BlockSpec(memory_space=pltpu.MemorySpace.VMEM)
    smem = pl.BlockSpec(memory_space=pltpu.MemorySpace.SMEM)
    out = pl.pallas_call(
        _make_kernel(k1p, c, y_dim, b),
        out_shape=jax.ShapeDtypeStruct((1, 1), jnp.float32),
        in_specs=[vmem, vmem, vmem],
        out_specs=smem,
    )(x_aug, y_samples.astype(jnp.float32), packed)
    return out[0, 0]


# ----------------------------------------------------------------------- reference

def _reference(x, y, params):
    """Pure-JAX reference reproducing the PyTorch forward semantics exactly."""
    w1m, b1m, w2m, b2m, w1v, b1v, w2v, b2v = params
    B = x.shape[0]
    mu = jnp.maximum(x @ w1m + b1m, 0.0) @ w2m + b2m
    logvar = jnp.tanh(jnp.maximum(x @ w1v + b1v, 0.0) @ w2v + b2v)
    positive = (-((mu - y) ** 2) / 2.0 / jnp.exp(logvar) - logvar / 2.0).sum(-1)    # (B,)
    diff = y[None, :, :] - mu[:, None, :]
    all_probs = (-(diff ** 2) / 2.0 / jnp.exp(logvar)[:, None, :]
                 - logvar[:, None, :] / 2.0).sum(-1)                                # (B,B)
    diag_mask = jnp.eye(B)[:, :, None] * -20.0                                      # (B,B,1)
    vals = all_probs + diag_mask                                                    # (B,B,B)
    m = jnp.max(vals, axis=0)
    negative = m + jnp.log(jnp.sum(jnp.exp(vals - m[None]), axis=0)) - math.log(B - 1.0)
    return (positive[None, :] - negative).mean()


def _init_linear(key, fan_in, fan_out):
    kw, kb = jax.random.split(key)
    bound = 1.0 / math.sqrt(fan_in)
    w = jax.random.uniform(kw, (fan_in, fan_out), jnp.float32, -bound, bound)
    b = jax.random.uniform(kb, (1, fan_out), jnp.float32, -bound, bound)
    return w, b


if __name__ == "__main__":
    B, X_DIM, Y_DIM, HIDDEN = 8, 32, 32, 32
    H = HIDDEN // 2

    key = jax.random.PRNGKey(0)
    k_x, k_y, k1, k2, k3, k4 = jax.random.split(key, 6)

    x_samples = jax.random.normal(k_x, (B, X_DIM), jnp.float32)
    y_samples = jax.random.normal(k_y, (B, Y_DIM), jnp.float32)

    w1m, b1m = _init_linear(k1, X_DIM, H)
    w2m, b2m = _init_linear(k2, H, Y_DIM)
    w1v, b1v = _init_linear(k3, X_DIM, H)
    w2v, b2v = _init_linear(k4, H, Y_DIM)
    params = (w1m, b1m, w2m, b2m, w1v, b1v, w2v, b2v)

    out = l1out_ub_forward(x_samples, y_samples, params, hidden_half=H)
    out = jax.block_until_ready(out)

    ref = _reference(x_samples, y_samples, params)
    # analytic lse collapse / exp(-logvar) multiply / mean re-association change
    # rounding order only; differences are far below this tolerance.
    assert jnp.allclose(out, ref, rtol=1e-5, atol=2e-5), (out, ref)

    print("KERNEL_OK")
</pallas_src>

<mosaic_0001>
module attributes {stable_mosaic.version = 11 : i64} {
  func.func @kernel(%arg0: memref<8x40xf32, #tpu.memory_space<vmem>>, %arg1: memref<8x32xf32, #tpu.memory_space<vmem>>, %arg2: memref<104x64xf32, #tpu.memory_space<vmem>>, %arg3: memref<1x1xf32, #tpu.memory_space<smem>>) attributes {dimension_semantics = [], scalar_prefetch = 0 : i64, scratch_operands = 0 : i64, tpu.core_type = #tpu.core_type<tc>} {
    %c0 = arith.constant 0 : index
    %c0_0 = arith.constant 0 : index
    %0 = vector.load %arg0[%c0, %c0_0] : memref<8x40xf32, #tpu.memory_space<vmem>>, vector<8x40xf32>
    %c0_1 = arith.constant 0 : index
    %c0_2 = arith.constant 0 : index
    %1 = vector.load %arg1[%c0_1, %c0_2] : memref<8x32xf32, #tpu.memory_space<vmem>>, vector<8x32xf32>
    %c0_3 = arith.constant 0 : index
    %c0_4 = arith.constant 0 : index
    %2 = vector.load %arg2[%c0_3, %c0_4] : memref<104x64xf32, #tpu.memory_space<vmem>>, vector<40x64xf32>
    %c40 = arith.constant 40 : index
    %c0_5 = arith.constant 0 : index
    %3 = vector.load %arg2[%c40, %c0_5] : memref<104x64xf32, #tpu.memory_space<vmem>>, vector<64x64xf32>
    %cst = arith.constant dense<0.000000e+00> : vector<8x64xf32>
    %4 = tpu.matmul %0, %2, %cst {dimension_numbers = #tpu.dot_dimension_numbers<[1], [0], [0], [1], [0, 0, 1, 1], [], []>} : vector<8x40xf32>, vector<40x64xf32>, vector<8x64xf32> -> vector<8x64xf32>
    %cst_6 = arith.constant 0.000000e+00 : f32
    %5 = vector.broadcast %cst_6 : f32 to vector<8x64xf32>
    %6 = arith.maximumf %4, %5 : vector<8x64xf32>
    %cst_7 = arith.constant dense<0.000000e+00> : vector<8x64xf32>
    %7 = tpu.matmul %6, %3, %cst_7 {dimension_numbers = #tpu.dot_dimension_numbers<[1], [0], [0], [1], [0, 0, 1, 1], [], []>} : vector<8x64xf32>, vector<64x64xf32>, vector<8x64xf32> -> vector<8x64xf32>
    %8 = vector.extract_strided_slice %7 {offsets = [0, 0], sizes = [8, 32], strides = [1, 1]} : vector<8x64xf32> to vector<8x32xf32>
    %9 = vector.extract_strided_slice %7 {offsets = [0, 32], sizes = [8, 32], strides = [1, 1]} : vector<8x64xf32> to vector<8x32xf32>
    %10 = math.tanh %9 : vector<8x32xf32>
    %cst_8 = arith.constant 0.000000e+00 : f32
    %11 = vector.broadcast %cst_8 : f32 to vector<8x32xf32>
    %12 = arith.subf %11, %10 : vector<8x32xf32>
    %13 = math.exp %12 : vector<8x32xf32>
    %14 = vector.shape_cast %1 : vector<8x32xf32> to vector<1x8x32xf32>
    %15 = vector.shape_cast %8 : vector<8x32xf32> to vector<8x1x32xf32>
    %16 = vector.broadcast %14 : vector<1x8x32xf32> to vector<8x8x32xf32>
    %17 = vector.broadcast %15 : vector<8x1x32xf32> to vector<8x8x32xf32>
    %18 = arith.subf %16, %17 : vector<8x8x32xf32>
    %19 = arith.mulf %18, %18 : vector<8x8x32xf32>
    %20 = vector.shape_cast %13 : vector<8x32xf32> to vector<8x1x32xf32>
    %21 = vector.broadcast %20 : vector<8x1x32xf32> to vector<8x8x32xf32>
    %22 = arith.mulf %19, %21 : vector<8x8x32xf32>
    %cst_9 = arith.constant dense<0.000000e+00> : vector<8x8xf32>
    %23 = vector.multi_reduction <add>, %22, %cst_9 [2] : vector<8x8x32xf32> to vector<8x8xf32>
    %cst_10 = arith.constant dense<0.000000e+00> : vector<8xf32>
    %24 = vector.multi_reduction <add>, %10, %cst_10 [1] : vector<8x32xf32> to vector<8xf32>
    %25 = vector.shape_cast %24 : vector<8xf32> to vector<8x1xf32>
    %26 = vector.broadcast %25 : vector<8x1xf32> to vector<8x8xf32>
    %27 = arith.addf %23, %26 : vector<8x8xf32>
    %cst_11 = arith.constant -5.000000e-01 : f32
    %28 = vector.broadcast %cst_11 : f32 to vector<8x8xf32>
    %29 = arith.mulf %28, %27 : vector<8x8xf32>
    %30 = tpu.iota {dimensions = array<i32: 0>} : vector<8x8xi32>
    %31 = tpu.iota {dimensions = array<i32: 1>} : vector<8x8xi32>
    %32 = arith.cmpi eq, %30, %31 : vector<8x8xi32>
    %cst_12 = arith.constant 0.000000e+00 : f32
    %33 = vector.broadcast %cst_12 : f32 to vector<8x8xf32>
    %34 = arith.select %32, %29, %33 : vector<8x8xi1>, vector<8x8xf32>
    %35 = vector.shape_cast %34 : vector<8x8xf32> to vector<1x8x8xf32>
    %cst_13 = arith.constant dense<0.000000e+00> : vector<1xf32>
    %36 = vector.multi_reduction <add>, %35, %cst_13 [1, 2] : vector<1x8x8xf32> to vector<1xf32>
    %37 = vector.shape_cast %36 : vector<1xf32> to vector<1x1x1xf32>
    %38 = vector.extract %37[0, 0, 0] : f32 from vector<1x1x1xf32>
    %cst_14 = arith.constant 8.000000e+00 : f32
    %39 = arith.divf %38, %cst_14 : f32
    %40 = vector.shape_cast %29 : vector<8x8xf32> to vector<1x8x8xf32>
    %cst_15 = arith.constant dense<0.000000e+00> : vector<1xf32>
    %41 = vector.multi_reduction <add>, %40, %cst_15 [1, 2] : vector<1x8x8xf32> to vector<1xf32>
    %42 = vector.shape_cast %41 : vector<1xf32> to vector<1x1x1xf32>
    %43 = vector.extract %42[0, 0, 0] : f32 from vector<1x1x1xf32>
    %cst_16 = arith.constant 6.400000e+01 : f32
    %44 = arith.divf %43, %cst_16 : f32
    %cst_17 = arith.constant 2.94450686E-10 : f32
    %45 = arith.addf %44, %cst_17 : f32
    %46 = arith.subf %39, %45 : f32
    %c0_18 = arith.constant 0 : index
    %c0_19 = arith.constant 0 : index
    %47 = memref.load %arg3[%c0_18, %c0_19] : memref<1x1xf32, #tpu.memory_space<smem>>
    memref.store %46, %arg3[%c0_18, %c0_19] : memref<1x1xf32, #tpu.memory_space<smem>>
    return
  }
}

</mosaic_0001>

<bundles_post_ra>
// kernel: tpu_custom_call.1
= control target key start
LH: loop header
LB: loop body
LE: loop exit
PB: predicated region body
PF: predicated region fallthrough
CT: control target
= control target key end

     0   :  { %v696_v1 = vmov 0.0   ;;  %vm697_vm0 = vmmov 0   ;;  %s829_s0 = inlined_call_operand.vmem [shape: f32[8,40], index: 0, kind: input, shape index: {}]   ;;  %s830_s1 = inlined_call_operand.vmem [shape: f32[8,32], index: 1, kind: input, shape index: {}]   ;;  %s831_s2 = inlined_call_operand.vmem [shape: f32[104,64], index: 2, kind: input, shape index: {}]   ;;  %s832_s3 = inlined_call_operand.hbm [shape: f32[1,1], index: 3, kind: output, shape index: {}]  }
   0x1   :  { %v21_v0 = vld [vmem:[%s831_s2 + $0x20] sm:$0xff]  ;;  %638 = vmatprep.subr.mxu0 %v696_v1  ;;  %v20_v2 = vld [vmem:[%s831_s2 + $0x18] sm:$0xff]  ;;  %648 = vmatprep.mubr.msk.f32.mxu0 %vm697_vm0, %v696_v1  ;;  %v19_v5 = vld [vmem:[%s831_s2 + $0x10] sm:$0xff] }
   0x2   :  { %639 = vmatpush3.msra.mxu0 %v21_v0  ;;  %651 = vmatprep.subr.mxu1 %v696_v1  ;;  %v29_v3 = vld [vmem:[%s831_s2 + $0x60] sm:$0xff]  ;;  %v28_v4 = vld [vmem:[%s831_s2 + $0x58] sm:$0xff]  ;;  %v27_v6 = vld [vmem:[%s831_s2 + $0x50] sm:$0xff] }
   0x3   :  { %640 = vmatprep.subr.mxu0 %v696_v1  ;;  %652 = vmatpush3.msra.mxu1 %v29_v3 }
   0x4   :  { %641 = vmatpush3.msra.mxu0 %v20_v2  ;;  %653 = vmatprep.subr.mxu1 %v696_v1 }
   0x5   :  { %8 = vsyncpa [#allocation3], 0  ;;  %642 = vmatprep.subr.mxu0 %v696_v1  ;;  %v18_v7 = vld [vmem:[%s831_s2 + $0x8] sm:$0xff]  ;;  %654 = vmatpush3.msra.mxu1 %v28_v4  ;;  %v17_v9 = vld [vmem:[%s831_s2] sm:$0xff]  ;;  %vm30_vm1 = vcmask 326656   ;;  %vm105_vm2 = vcmask 523264   ;;  %v188_v20 = vlaneseq }
   0x6   :  { %643 = vmatpush3.msra.mxu0 %v19_v5  ;;  %655 = vmatprep.subr.mxu1 %v696_v1  ;;  %v26_v8 = vld [vmem:[%s831_s2 + $0x48] sm:$0xff]  ;;  %v15_v10 = vld [vmem:[%s829_s0] sm:$0xff]  ;;  %v24_v12 = vld [vmem:[%s831_s2 + $0x38] sm:$0xff]  ;;  %v698_v18 = vmov 1966171168   ;;  %vm403_vm3 = vcmask 261120  }
   0x7   :  { %644 = vmatprep.subr.mxu0 %v696_v1  ;;  %656 = vmatpush3.msra.mxu1 %v27_v6  ;;  %v25_v11 = vld [vmem:[%s831_s2 + $0x40] sm:$0xff]  ;;  %v23_v13 = vld [vmem:[%s831_s2 + $0x30] sm:$0xff]  ;;  %v22_v14 = vld [vmem:[%s831_s2 + $0x28] sm:$0xff]  ;;  %v186_v19 = vunpack.c.l.s4 %v698_v18  ;;  %v767_v22 = vshrl.u32 %v188_v20, 7  ;;  %s699_s2 = smov 96   ;;  %vm561_vm4 = vcmask 1041409  }
   0x8   :  { %645 = vmatpush3.msra.mxu0 %v18_v7  ;;  %657 = vmatprep.subr.mxu1 %v696_v1  ;;  %vm563_vm5 = vcmask 1042434   ;;  %vm565_vm6 = vcmask 1043459   ;;  %vm567_vm7 = vcmask 1044484   ;;  %vm569_vm8 = vcmask 1045509   ;;  %s701_s19 = smov [#allocation2]  }
   0x9   :  { %646 = vmatprep.subr.mxu0 %v696_v1  ;;  %658 = vmatpush3.msra.mxu1 %v26_v8  ;;  %v187_v21 = vunpack.c.0.s8 %v186_v19  ;;  %v774_v41 = vsub.s32 0, %v767_v22  ;;  %vm571_vm9 = vcmask 1046534   ;;  %vm573_vm10 = vcmask 1047559  }
   0xa   :  { %647 = vmatpush3.msra.mxu0 %v17_v9  ;;  %659 = vmatprep.subr.mxu1 %v696_v1  ;;  %vm577_vm11 = vcmask 64512  }
   0xb   :  { %649 = vmatmul.mubr.msk.f32.vlgmr.msra.gmra.mxu0 %vm30_vm1, %v15_v10  ;;  %660 = vmatpush3.msra.mxu1 %v25_v11  ;;  %v190_v23 = vsub.s32 %v187_v21, %v767_v22 }
   0xc   :  { %661 = vmatprep.subr.mxu1 %v696_v1  ;;  %667 = vmatprep.mubr.msk.f32.mxu1 %vm697_vm0, %v696_v1 }
   0xd   :  { %662 = vmatpush3.msra.mxu1 %v24_v12 }
   0xe   :  { %663 = vmatprep.subr.mxu1 %v696_v1 }
   0xf   :  { %664 = vmatpush3.msra.mxu1 %v23_v13 }
  0x10   :  { %665 = vmatprep.subr.mxu1 %v696_v1  ;;  %v16_v1 = vld [vmem:[%s830_s1] sm:$0xff] }
  0x11   :  { %666 = vmatpush3.msra.mxu1 %v22_v14 }
  0xcb   :  { %v100_v15 = vpop.f32.mrf.mxu0 }
  0xcc   :  { %v104_v16 = vmax.f32 %v100_v15, 0.0 }
  0xcd   :  { %v650_v17 = vpop.f32.mrf.mxu0 }
  0xce   :  { %668 = vmatmul.mubr.msk.f32.vlgmr.msra.gmra.mxu1 %vm105_vm2, %v104_v16 }
 0x18e   :  { %v175_v24 = vpop.f32.mrf.mxu1 }
 0x18f   :  { %682 = vtanh.f32 %v175_v24  ;;  %v184_v25 = vcombine.high %v175_v24, %v175_v24  ;;  %v191_v26 = vrot.slane %v175_v24, %v190_v23 }
 0x190   :  { %v669_v27 = vpop.f32.mrf.mxu1 }
 0x191   :  { %v198_v28 = vrot.slane %v184_v25, %v190_v23  ;;  %v199_v29 = vcombine.high %v191_v26, %v191_v26  ;;  %v207_v30 = vrot.slane %v191_v26, %v190_v23 }
 0x193   :  { %v200_v31 = vcombine.high %v198_v28, %v198_v28  ;;  %v221_v32 = vrot.slane %v199_v29, %v190_v23  ;;  %v214_v33 = vrot.slane %v198_v28, %v190_v23  ;;  %v229_v63 = vcombine.high %v207_v30, %v207_v30 }
 0x194   :  { %v236_v0 = vrot.slane %v207_v30, %v774_v41 }
 0x195   :  { %v770_v34 = vrot.slane %v200_v31, %v190_v23  ;;  %v244_v2 = vrot.slane %v229_v63, %v774_v41  ;;  %v240_v4 = vrot.slane %v221_v32, %v774_v41  ;;  %v231_v5 = vcombine.high %v221_v32, %v221_v32 }
 0x196   :  { %v273_v3 = vsub.f32 %v16_v1, %v236_v0  ;;  %v252_v7 = vrot.slane %v214_v33, %v774_v41  ;;  %v230_v8 = vcombine.high %v214_v33, %v214_v33  ;;  %v454_v63 = vsub.s32 4, %v767_v22 }
 0x197   :  { %v275_v6 = vsub.f32 %v16_v1, %v244_v2  ;;  %v274_v10 = vsub.f32 %v16_v1, %v240_v4  ;;  %v248_v11 = vrot.slane %v231_v5, %v774_v41  ;;  %v256_v18 = vrot.slane %v770_v34, %v774_v41 }
 0x198   :  { %v281_v9 = vmul.f32 %v273_v3, %v273_v3  ;;  %v277_v15 = vsub.f32 %v16_v1, %v252_v7  ;;  %v260_v16 = vrot.slane %v230_v8, %v774_v41  ;;  %v232_v19 = vcombine.high %v770_v34, %v770_v34 }
 0x199   :  { %v283_v14 = vmul.f32 %v275_v6, %v275_v6  ;;  %v276_v25 = vsub.f32 %v16_v1, %v248_v11  ;;  %v278_v32 = vsub.f32 %v16_v1, %v256_v18  ;;  %v450_v7 = vsub.s32 3, %v767_v22 }
 0x19a   :  { %v285_v28 = vmul.f32 %v277_v15, %v277_v15  ;;  %v279_v30 = vsub.f32 %v16_v1, %v260_v16  ;;  %v264_v34 = vrot.slane %v232_v19, %v774_v41 }
 0x19c   :  { %v683_v35 = vpop.eup %682 }
 0x19d   :  { %v180_v36 = vsub.f32 0.0, %v683_v35  ;;  %429 = vrot.lane.b32.xlu1 %v683_v35, %s699_s2  ;;  %v284_v35 = vmul.f32 %v276_v25, %v276_v25  ;;  %v466_v25 = vsub.s32 7, %v767_v22 }
 0x19f   :  { %v181_v37 = vmul.f32 1.442695, %v180_v36 }
 0x1a1   :  { %684 = vpow2.f32 %v181_v37 }
 0x1ae   :  { %v685_v38 = vpop.eup %684 }
 0x1af   :  { %v297_v39 = vrot.slane %v685_v38, %v190_v23  ;;  %v290_v40 = vcombine.high %v685_v38, %v685_v38 }
 0x1b1   :  { %v313_v42 = vrot.slane %v297_v39, %v190_v23  ;;  %v305_v43 = vcombine.high %v297_v39, %v297_v39  ;;  %v304_v44 = vrot.slane %v290_v40, %v190_v23  ;;  %v287_v40 = vmul.f32 %v279_v30, %v279_v30 }
 0x1b3   :  { %v342_v45 = vrot.slane %v313_v42, %v774_v41  ;;  %v335_v46 = vcombine.high %v313_v42, %v313_v42  ;;  %v327_v47 = vrot.slane %v305_v43, %v190_v23  ;;  %v320_v49 = vrot.slane %v304_v44, %v190_v23 }
 0x1b4   :  { %v306_v52 = vcombine.high %v304_v44, %v304_v44  ;;  %v286_v44 = vmul.f32 %v278_v32, %v278_v32 }
 0x1b5   :  { %371 = vrot.lane.b32.xlu0 %v342_v45, %s699_s2  ;;  %v350_v48 = vrot.slane %v335_v46, %v774_v41  ;;  %v346_v50 = vrot.slane %v327_v47, %v774_v41  ;;  %v337_v51 = vcombine.high %v327_v47, %v327_v47  ;;  %v358_v53 = vrot.slane %v320_v49, %v774_v41 }
 0x1b6   :  { %v336_v54 = vcombine.high %v320_v49, %v320_v49  ;;  %v334_v56 = vrot.slane %v306_v52, %v190_v23  ;;  %v282_v23 = vmul.f32 %v274_v10, %v274_v10  ;;  %v280_v46 = vsub.f32 %v16_v1, %v264_v34 }
 0x1b7   :  { %375 = vrot.lane.b32.xlu1 %v350_v48, %s699_s2  ;;  %v354_v55 = vrot.slane %v337_v51, %v774_v41 }
 0x1b8   :  { %v366_v57 = vrot.slane %v336_v54, %v774_v41  ;;  %v362_v58 = vrot.slane %v334_v56, %v774_v41  ;;  %v338_v59 = vcombine.high %v334_v56, %v334_v56  ;;  %v288_v51 = vmul.f32 %v280_v46, %v280_v46 }
 0x1b9   :  { %373 = vrot.lane.b32.xlu0 %v346_v50, %s699_s2  ;;  %v700_v54 = vmov 0  }
 0x1ba   :  { %v370_v60 = vrot.slane %v338_v59, %v774_v41  ;;  %680 = vset.pattern.permute.xlu1 %v700_v54  ;;  %681 = vset.pattern.permute.xlu0 %v700_v54  ;;  %v442_v59 = vsub.s32 1, %v767_v22 }
 0x1bb   :  { %379 = vrot.lane.b32.xlu1 %v358_v53, %s699_s2 }
 0x1bd   :  { %377 = vrot.lane.b32.xlu0 %v354_v55, %s699_s2 }
 0x1bf   :  { %383 = vrot.lane.b32.xlu1 %v366_v57, %s699_s2  ;;  %v446_v57 = vsub.s32 2, %v767_v22 }
 0x1c1   :  { %381 = vrot.lane.b32.xlu0 %v362_v58, %s699_s2 }
 0x1c5   :  { %385 = vrot.lane.b32.xlu0 %v370_v60, %s699_s2 }
 0x20f   :  { %v430_v61 = vpop.permute.xlu1 %429 }
 0x210   :  { %v432_v62 = vsel %vm403_vm3, %v430_v61, 0.0 }
 0x211   :  { %433 = vadd.xlane.f32.xlu1 %v432_v62 }
 0x227   :  { %v372_v12 = vpop.permute.xlu0 %371 }
 0x228   :  { %v395_v13 = vmul.f32 %v372_v12, %v281_v9 }
 0x229   :  { %v376_v17 = vpop.permute.xlu1 %375 }
 0x22a   :  { %v397_v21 = vmul.f32 %v376_v17, %v283_v14  ;;  %v404_v24 = vsel %vm403_vm3, %v395_v13, 0.0  ;;  %v458_v13 = vsub.s32 5, %v767_v22  ;;  %v462_v17 = vsub.s32 6, %v767_v22 }
 0x22b   :  { %v374_v26 = vpop.permute.xlu0 %373  ;;  %405 = vadd.xlane.f32.xlu0 %v404_v24 }
 0x22c   :  { %v396_v27 = vmul.f32 %v374_v26, %v282_v23  ;;  %v410_v29 = vsel %vm403_vm3, %v397_v21, 0.0 }
 0x22d   :  { %v380_v31 = vpop.permute.xlu1 %379  ;;  %411 = vadd.xlane.f32.xlu1 %v410_v29 }
 0x22e   :  { %v399_v33 = vmul.f32 %v380_v31, %v285_v28  ;;  %v407_v36 = vsel %vm403_vm3, %v396_v27, 0.0 }
 0x22f   :  { %v378_v37 = vpop.permute.xlu0 %377  ;;  %408 = vadd.xlane.f32.xlu0 %v407_v36  ;;  %v495_v36 = vand.u32 127, %v188_v20 }
 0x230   :  { %v398_v38 = vmul.f32 %v378_v37, %v284_v35  ;;  %v416_v39 = vsel %vm403_vm3, %v399_v33, 0.0 }
 0x231   :  { %417 = vadd.xlane.f32.xlu1 %v416_v39  ;;  %v384_v42 = vpop.permute.xlu1 %383  ;;  %vm496_vm12 = vcmp.eq.s32.totalorder %v767_v22, %v495_v36 }
 0x232   :  { %v401_v43 = vmul.f32 %v384_v42, %v287_v40  ;;  %v413_v45 = vsel %vm403_vm3, %v398_v38, 0.0  ;;  %v531_v38 = vsub.s32 %v495_v36, %v767_v22 }
 0x233   :  { %v382_v47 = vpop.permute.xlu0 %381  ;;  %414 = vadd.xlane.f32.xlu0 %v413_v45 }
 0x234   :  { %v400_v48 = vmul.f32 %v382_v47, %v286_v44  ;;  %v422_v49 = vsel %vm403_vm3, %v401_v43, 0.0 }
 0x235   :  { %423 = vadd.xlane.f32.xlu1 %v422_v49 }
 0x236   :  { %v419_v50 = vsel %vm403_vm3, %v400_v48, 0.0 }
 0x237   :  { %420 = vadd.xlane.f32.xlu0 %v419_v50  ;;  %v386_v52 = vpop.permute.xlu0 %385 }
 0x238   :  { %v402_v53 = vmul.f32 %v386_v52, %v288_v51 }
 0x23a   :  { %v425_v55 = vsel %vm403_vm3, %v402_v53, 0.0 }
 0x23b   :  { %426 = vadd.xlane.f32.xlu0 %v425_v55 }
 0x29a   :  { %v434_v56 = vpop.xlane.xlu1 %433 }
 0x29b   :  { %v439_v58 = vrot.slane %v434_v56, %v774_v41  ;;  %v447_v62 = vrot.slane %v434_v56, %v446_v57  ;;  %v443_v3 = vrot.slane %v434_v56, %v442_v59  ;;  %v455_v6 = vrot.slane %v434_v56, %v454_v63 }
 0x29c   :  { %v451_v12 = vrot.slane %v434_v56, %v450_v7  ;;  %v459_v18 = vrot.slane %v434_v56, %v458_v13  ;;  %v463_v24 = vrot.slane %v434_v56, %v462_v17  ;;  %v467_v29 = vrot.slane %v434_v56, %v466_v25 }
 0x2b4   :  { %v406_v60 = vpop.xlane.xlu0 %405 }
 0x2b5   :  { %v476_v61 = vadd.f32 %v439_v58, %v406_v60 }
 0x2b6   :  { %v412_v0 = vpop.xlane.xlu1 %411 }
 0x2b7   :  { %v484_v1 = vmul.f32 -0.5, %v476_v61  ;;  %v478_v2 = vadd.f32 %v447_v62, %v412_v0 }
 0x2b8   :  { %v409_v4 = vpop.xlane.xlu0 %408 }
 0x2b9   :  { %v477_v5 = vadd.f32 %v443_v3, %v409_v4  ;;  %506 = vperm.xlu1 %680, %v484_v1   ;;  %v486_v9 = vmul.f32 -0.5, %v478_v2 }
 0x2ba   :  { %v418_v8 = vpop.xlane.xlu1 %417 }
 0x2bb   :  { %v485_v41 = vmul.f32 -0.5, %v477_v5  ;;  %v480_v10 = vadd.f32 %v455_v6, %v418_v8 }
 0x2bc   :  { %v415_v11 = vpop.xlane.xlu0 %414 }
 0x2bd   :  { %512 = vperm.xlu1 %680, %v486_v9   ;;  %509 = vperm.xlu0 %681, %v485_v41   ;;  %v488_v14 = vmul.f32 -0.5, %v480_v10  ;;  %v479_v15 = vadd.f32 %v451_v12, %v415_v11 }
 0x2be   :  { %v424_v23 = vpop.xlane.xlu1 %423 }
 0x2bf   :  { %v487_v19 = vmul.f32 -0.5, %v479_v15  ;;  %v482_v26 = vadd.f32 %v463_v24, %v424_v23 }
 0x2c0   :  { %v421_v16 = vpop.xlane.xlu0 %420 }
 0x2c1   :  { %518 = vperm.xlu1 %680, %v488_v14   ;;  %v481_v21 = vadd.f32 %v459_v18, %v421_v16  ;;  %v490_v30 = vmul.f32 -0.5, %v482_v26 }
 0x2c3   :  { %v489_v27 = vmul.f32 -0.5, %v481_v21 }
 0x2c4   :  { %v427_v28 = vpop.xlane.xlu0 %426 }
 0x2c5   :  { %515 = vperm.xlu1 %680, %v487_v19   ;;  %v483_v31 = vadd.f32 %v467_v29, %v427_v28 }
 0x2c7   :  { %v491_v32 = vmul.f32 -0.5, %v483_v31 }
 0x2c9   :  { %521 = vperm.xlu1 %680, %v489_v27  }
 0x2cd   :  { %524 = vperm.xlu1 %680, %v490_v30  }
 0x2d1   :  { %527 = vperm.xlu1 %680, %v491_v32  }
 0x334   :  { %v507_v33 = vpop.permute.xlu1 %506 }
 0x335   :  { %v532_v42 = vrot.slane %v507_v33, %v531_v38 }
 0x338   :  { %v513_v35 = vpop.permute.xlu1 %512  ;;  %v510_v37 = vpop.permute.xlu0 %509 }
 0x339   :  { %v536_v40 = vrot.slane %v510_v37, %v531_v38  ;;  %v540_v43 = vrot.slane %v513_v35, %v531_v38 }
 0x33b   :  { %v562_v45 = vsel %vm561_vm4, %v536_v40, %v532_v42 }
 0x33c   :  { %v519_v34 = vpop.permute.xlu1 %518  ;;  %v564_v47 = vsel %vm563_vm5, %v540_v43, %v562_v45 }
 0x33d   :  { %v548_v20 = vrot.slane %v519_v34, %v531_v38 }
 0x340   :  { %v516_v39 = vpop.permute.xlu1 %515 }
 0x341   :  { %v544_v46 = vrot.slane %v516_v39, %v531_v38 }
 0x343   :  { %v566_v49 = vsel %vm565_vm6, %v544_v46, %v564_v47 }
 0x344   :  { %v522_v44 = vpop.permute.xlu1 %521  ;;  %v568_v52 = vsel %vm567_vm7, %v548_v20, %v566_v49 }
 0x345   :  { %v552_v50 = vrot.slane %v522_v44, %v531_v38 }
 0x347   :  { %v570_v54 = vsel %vm569_vm8, %v552_v50, %v568_v52 }
 0x348   :  { %v525_v48 = vpop.permute.xlu1 %524 }
 0x349   :  { %v556_v51 = vrot.slane %v525_v48, %v531_v38 }
 0x34b   :  { %v572_v56 = vsel %vm571_vm9, %v556_v51, %v570_v54 }
 0x34c   :  { %v528_v53 = vpop.permute.xlu1 %527 }
 0x34d   :  { %v560_v55 = vrot.slane %v528_v53, %v531_v38 }
 0x34f   :  { %v574_v57 = vsel %vm573_vm10, %v560_v55, %v572_v56 }
 0x350   :  { %v591_v58 = vsel %vm577_vm11, %v574_v57, 0.0  ;;  %v576_v59 = vsel %vm496_vm12, %v574_v57, 0.0 }
 0x351   :  { %592 = vadd.xlane.f32.xlu0 %v591_v58  ;;  %v578_v60 = vsel %vm577_vm11, %v576_v59, 0.0 }
 0x352   :  { %579 = vadd.xlane.f32.xlu1 %v578_v60 }
 0x3da   :  { %v593_v61 = vpop.xlane.xlu0 %592 }
 0x3db   :  { %v594_v62 = vrot.slane %v593_v61, 4  ;;  %v580_v63 = vpop.xlane.xlu1 %579 }
 0x3dc   :  { %v581_v0 = vrot.slane %v580_v63, 4 }
 0x3dd   :  { %v595_v1 = vadd.f32 %v594_v62, %v593_v61 }
 0x3de   :  { %v582_v2 = vadd.f32 %v581_v0, %v580_v63 }
 0x3df   :  { %v596_v3 = vrot.slane %v595_v1, 2 }
 0x3e0   :  { %v583_v4 = vrot.slane %v582_v2, 2 }
 0x3e1   :  { %v597_v5 = vadd.f32 %v596_v3, %v595_v1 }
 0x3e2   :  { %v584_v6 = vadd.f32 %v583_v4, %v582_v2 }
 0x3e3   :  { %v598_v7 = vrot.slane %v597_v5, 1 }
 0x3e4   :  { %v585_v8 = vrot.slane %v584_v6, 1 }
 0x3e5   :  { %v599_v22 = vadd.f32 %v598_v7, %v597_v5 }
 0x3e6   :  { %v586_v9 = vadd.f32 %v585_v8, %v584_v6 }
 0x3e8   :  { %670 = vpush %v586_v9 }
 0x3e9   :  { %672 = vpush %v599_v22 }
 0x419   :  { %s671_s1 = spop %670 }
 0x41a   :  { %s673_s14 = spop %672  ;;  %s590_s16 = smul.f32 0.125, %s671_s1 }
 0x41b   :  { %s603_s15 = smul.f32 0.015625, %s673_s14 }
 0x41d   :  { %s604_s17 = sadd.f32 2.9445069e-10, %s603_s15 }
 0x41f   :  { %s605_s18 = ssub.f32 %s590_s16, %s604_s17 }
 0x421   :  { %607 = sst [smem:[#allocation2]] %s605_s18 }
 0x422   :  { %615 = dma.smem_to_hbm %s701_s19, 16, %s832_s3, [#allocation3]  }
 0x423   :  { %694 = dma.done.wait [#allocation3], 16  }
 0x424   :  { %695 = vsyncadd [#allocation3], 4294967280 }
 0x425   :  { %619 = sfence }
 0x426   :  { %620 = vsyncpa [#allocation3], 1 }

</bundles_post_ra>
